<compile_context>
chip_gen: v7x
topology: tpu7x:2x2x1
jax: 0.10.0
libtpu: 0.0.40
codegen_flags: <defaults>
</compile_context>

<pallas_src>
import math

import jax
import jax.numpy as jnp
from jax.experimental import pallas as pl
from jax.experimental.pallas import tpu as pltpu


def _round_up(x, m):
    return (x + m - 1) // m * m


def _lcm(a, b):
    return a * b // math.gcd(a, b)


def _pad2(a, rows, cols):
    pr, pc = rows - a.shape[0], cols - a.shape[1]
    if pr == 0 and pc == 0:
        return a
    return jnp.pad(a, ((0, pr), (0, pc)))


def plan_row_tiles(n, tm1=1024, tm2=256, tn=2048):
    """Clamp row/column tiles for small graphs, return the shared row padding.

    n_pad must be divisible by the pass-1 row tile (tm1), the pass-2 row tile
    (tm2) and the pass-2 A-column tile (tn); tn is kept a multiple of 128 so
    the A blocks stay lane-dense.
    """
    n128 = _round_up(max(n, 1), 128)
    tm1 = _round_up(min(tm1, n128), 8)
    tm2 = _round_up(min(tm2, n128), 8)
    tn = _round_up(min(tn, n128), 128)
    n_pad = _round_up(n, _lcm(_lcm(tm1, tm2), tn))
    return tm1, tm2, tn, n_pad


# ----------------------------------------------------------------------------
# Pass 1: K-tiled fused feature transform.
#   [XW1 | XWlx] = X @ [W1 | Wlx]   -> both stored bf16
# Grid: (row_tiles, k_tiles); single (tm1, 2*h_pad) f32 accumulator; init at
# k==0, emit (split + cast) at k==last.  Reduction axis last + "arbitrary".
# ----------------------------------------------------------------------------
def xw_kernel(x_ref, wc_ref, xw1_ref, xwl_ref, acc_ref):
    k = pl.program_id(1)

    @pl.when(k == 0)
    def _():
        acc_ref[...] = jnp.zeros_like(acc_ref)

    # X arrives f32; cast in-kernel (avoids an extra wrapper-side HBM pass).
    acc_ref[...] += jnp.dot(x_ref[...].astype(jnp.bfloat16), wc_ref[...],
                            preferred_element_type=jnp.float32)

    @pl.when(k == pl.num_programs(1) - 1)
    def _():
        h_pad = xw1_ref.shape[-1]          # static, 128-aligned split point
        xw1_ref[...] = acc_ref[:, :h_pad].astype(xw1_ref.dtype)
        xwl_ref[...] = acc_ref[:, h_pad:].astype(xwl_ref.dtype)


# ----------------------------------------------------------------------------
# Pass 2: adjacency propagation (row x column tiled) + linear + MLP head.
#   h is accumulated over A's column tiles in a (tm2, h_pad) f32 scratch;
#   bias/ReLU + linear(concat) + MLP run only at the last column tile.
# VMEM per step is bounded independently of N.
# ----------------------------------------------------------------------------
def head_kernel(a_ref, xw1_ref, xwl_ref,
                b1_ref, wlh_ref, bl_ref,
                wm1_ref, bm1_ref, wm2_ref, bm2_ref, wm3_ref, bm3_ref,
                o_ref, h_acc):
    kt = pl.program_id(1)

    @pl.when(kt == 0)
    def _():
        h_acc[...] = jnp.zeros_like(h_acc)

    # Partial A_norm[rows, cols] @ XW1[cols, :]
    h_acc[...] += jnp.dot(a_ref[...], xw1_ref[...],
                          preferred_element_type=jnp.float32)

    @pl.when(kt == pl.num_programs(1) - 1)
    def _():
        # h = relu(A_norm[rows] @ XW1 + b1)   (GCNConv bias + ReLU)
        h = jnp.maximum(h_acc[...] + b1_ref[...], 0.0)
        # dropout(training=False) -> identity

        # z = relu(X@Wlx + h@Wlh + bl)   (linear over concat([x, h], dim=1))
        z = (xwl_ref[...].astype(jnp.float32) + bl_ref[...]
             + jnp.dot(h.astype(jnp.bfloat16), wlh_ref[...],
                       preferred_element_type=jnp.float32))
        z = jnp.maximum(z, 0.0)
        # dropout -> identity

        # MLP head
        m = jnp.maximum(
            jnp.dot(z.astype(jnp.bfloat16), wm1_ref[...],
                    preferred_element_type=jnp.float32) + bm1_ref[...], 0.0)
        m = jnp.maximum(
            jnp.dot(m.astype(jnp.bfloat16), wm2_ref[...],
                    preferred_element_type=jnp.float32) + bm2_ref[...], 0.0)
        o_ref[...] = jnp.dot(m.astype(jnp.bfloat16), wm3_ref[...],
                             preferred_element_type=jnp.float32) + bm3_ref[...]


# ----------------------------------------------------------------------------
# Wrapper: padding, BlockSpecs/grids, and the two pallas_calls.
# ----------------------------------------------------------------------------
def gcn_forward(x, a_norm, params, *, tm1=1024, tk=512, tm2=256, tn=2048,
                vmem_limit=56 * 1024 * 1024):
    (w1, b1, wlx, wlh, bl, wm1, bm1, wm2, bm2, wm3, bm3) = params
    n, f = x.shape
    h = w1.shape[1]
    h2 = wm1.shape[1]
    h4 = wm2.shape[1]
    c = wm3.shape[1]

    tm1, tm2, tn, n_pad = plan_row_tiles(n, tm1, tm2, tn)
    tk = min(tk, _round_up(f, 128))

    f_pad = _round_up(f, tk)
    h_pad = _round_up(h, 128)
    h2_pad = _round_up(h2, 128)
    h4_pad = _round_up(h4, 128)
    c_pad = _round_up(c, 128)

    bf16 = jnp.bfloat16

    # X stays f32 (cast happens inside pass 1).
    x_p = _pad2(x, n_pad, f_pad)
    # A_norm is expected already padded + bf16 (see build_norm_adj); fix up
    # only if a caller passes a raw/unpadded matrix.
    if a_norm.shape != (n_pad, n_pad) or a_norm.dtype != bf16:
        a_p = _pad2(a_norm, n_pad, n_pad).astype(bf16)
    else:
        a_p = a_norm

    # Fused GCNConv / linear-x weight -> one MXU stream, one accumulator.
    wc_p = jnp.concatenate(
        [_pad2(w1, f_pad, h_pad), _pad2(wlx, f_pad, h_pad)], axis=1).astype(bf16)
    wlh_p = _pad2(wlh, h_pad, h_pad).astype(bf16)
    wm1_p = _pad2(wm1, h_pad, h2_pad).astype(bf16)
    wm2_p = _pad2(wm2, h2_pad, h4_pad).astype(bf16)
    wm3_p = _pad2(wm3, h4_pad, c_pad).astype(bf16)
    b1_p = _pad2(b1, 1, h_pad)             # biases stay f32 (zero-padded)
    bl_p = _pad2(bl, 1, h_pad)
    bm1_p = _pad2(bm1, 1, h2_pad)
    bm2_p = _pad2(bm2, 1, h4_pad)
    bm3_p = _pad2(bm3, 1, c_pad)

    row1 = n_pad // tm1
    kt1 = f_pad // tk
    row2 = n_pad // tm2
    col2 = n_pad // tn

    # ---------------- pass 1: [XW1 | XWlx] = X @ [W1 | Wlx] ----------------
    cost1 = pl.CostEstimate(
        flops=2 * n_pad * f_pad * 2 * h_pad,
        transcendentals=0,
        bytes_accessed=(x_p.size * 4                      # X f32, read once
                        + row1 * wc_p.size * 2            # weights per row tile
                        + 2 * n_pad * h_pad * 2))         # two bf16 outputs
    xw1, xwl = pl.pallas_call(
        xw_kernel,
        out_shape=(jax.ShapeDtypeStruct((n_pad, h_pad), bf16),
                   jax.ShapeDtypeStruct((n_pad, h_pad), bf16)),
        grid_spec=pltpu.PrefetchScalarGridSpec(
            num_scalar_prefetch=0,
            grid=(row1, kt1),
            in_specs=[
                pl.BlockSpec((tm1, tk), lambda i, k: (i, k)),        # X (f32)
                pl.BlockSpec((tk, 2 * h_pad), lambda i, k: (k, 0)),  # [W1|Wlx]
            ],
            out_specs=[
                pl.BlockSpec((tm1, h_pad), lambda i, k: (i, 0)),     # XW1
                pl.BlockSpec((tm1, h_pad), lambda i, k: (i, 0)),     # XWlx
            ],
            scratch_shapes=[pltpu.VMEM((tm1, 2 * h_pad), jnp.float32)]),
        compiler_params=pltpu.CompilerParams(
            dimension_semantics=("parallel", "arbitrary"),
            vmem_limit_bytes=vmem_limit),
        cost_estimate=cost1,
    )(x_p, wc_p)

    # -------- pass 2: propagate (column-tiled) + linear + MLP head --------
    cost2 = pl.CostEstimate(
        flops=2 * n_pad * (n_pad * h_pad + h_pad * h_pad + h_pad * h2_pad
                           + h2_pad * h4_pad + h4_pad * c_pad),
        transcendentals=0,
        bytes_accessed=(a_p.size * 2                       # A bf16, read once
                        + row2 * xw1.size * 2              # XW1 per row tile
                        + xwl.size * 2
                        + n_pad * c_pad * 4
                        + row2 * 2 * (wlh_p.size + wm1_p.size
                                      + wm2_p.size + wm3_p.size)))

    def full(shape):
        return pl.BlockSpec(shape, lambda i, k: (0, 0))

    out_p = pl.pallas_call(
        head_kernel,
        out_shape=jax.ShapeDtypeStruct((n_pad, c_pad), jnp.float32),
        grid_spec=pltpu.PrefetchScalarGridSpec(
            num_scalar_prefetch=0,
            grid=(row2, col2),
            in_specs=[
                # TODO(synk): consider pipeline_mode=pl.Buffered(3) on A (the
                # only large streaming input) once available on target jax.
                pl.BlockSpec((tm2, tn), lambda i, k: (i, k)),     # A block
                pl.BlockSpec((tn, h_pad), lambda i, k: (k, 0)),   # XW1 col blk
                pl.BlockSpec((tm2, h_pad), lambda i, k: (i, 0)),  # XWlx row blk
                full((1, h_pad)),                                 # b1
                full((h_pad, h_pad)),                             # Wlh
                full((1, h_pad)),                                 # bl
                full((h_pad, h2_pad)), full((1, h2_pad)),         # Wm1, bm1
                full((h2_pad, h4_pad)), full((1, h4_pad)),        # Wm2, bm2
                full((h4_pad, c_pad)), full((1, c_pad)),          # Wm3, bm3
            ],
            out_specs=pl.BlockSpec((tm2, c_pad), lambda i, k: (i, 0)),
            scratch_shapes=[pltpu.VMEM((tm2, h_pad), jnp.float32)]),
        compiler_params=pltpu.CompilerParams(
            dimension_semantics=("parallel", "arbitrary"),
            vmem_limit_bytes=vmem_limit),
        cost_estimate=cost2,
    )(a_p, xw1, xwl, b1_p, wlh_p, bl_p,
      wm1_p, bm1_p, wm2_p, bm2_p, wm3_p, bm3_p)

    return out_p[:n, :c]


# ----------------------------------------------------------------------------
# Glue: dense symmetric GCN normalization (PyG gcn_norm semantics).
# Emits the matrix already padded to n_pad and in bf16 so gcn_forward does no
# extra O(N^2) cast/pad pass over it.
# ----------------------------------------------------------------------------
def build_norm_adj(edge_index, edge_weight, n, n_pad=None, dtype=jnp.bfloat16):
    if n_pad is None:
        n_pad = n
    src, dst = edge_index[0], edge_index[1]
    a = jnp.zeros((n_pad, n_pad), jnp.float32).at[dst, src].add(edge_weight)
    a = a.at[jnp.arange(n), jnp.arange(n)].add(1.0)      # self loops, weight 1
    deg = a.sum(axis=1)
    dinv = jnp.where(deg > 0, 1.0 / jnp.sqrt(deg), 0.0)
    return (dinv[:, None] * a * dinv[None, :]).astype(dtype)


def init_params(key, node_features, input_size, num_classes):
    """PyTorch Linear weights are [out, in]; stored pre-transposed [in, out]."""
    h, h2, h4 = input_size, input_size // 2, input_size // 4
    ks = jax.random.split(key, 10)

    def w(k, fan_in, fan_out):
        bound = 1.0 / jnp.sqrt(fan_in)
        return jax.random.uniform(k, (fan_in, fan_out), jnp.float32, -bound, bound)

    def b(k, fan_in, fan_out):
        bound = 1.0 / jnp.sqrt(fan_in)
        return jax.random.uniform(k, (1, fan_out), jnp.float32, -bound, bound)

    w1 = w(ks[0], node_features, h)              # GCNConv weight
    b1 = b(ks[1], node_features, h)              # GCNConv bias
    # Linear over concat([x, h]): split input axis to fold the concat.
    wl = w(ks[2], node_features + h, h)
    wlx, wlh = wl[:node_features], wl[node_features:]
    bl = b(ks[3], node_features + h, h)
    wm1, bm1 = w(ks[4], h, h2), b(ks[5], h, h2)
    wm2, bm2 = w(ks[6], h2, h4), b(ks[7], h2, h4)
    wm3, bm3 = w(ks[8], h4, num_classes), b(ks[9], h4, num_classes)
    return (w1, b1, wlx, wlh, bl, wm1, bm1, wm2, bm2, wm3, bm3)


def reference_forward(x, a_norm, params):
    """Pure-JAX reference matching the kernel's bf16-operand / f32-acc numerics
    (including the bf16 storage of XW1 and XWlx between the two passes)."""
    (w1, b1, wlx, wlh, bl, wm1, bm1, wm2, bm2, wm3, bm3) = params
    n = x.shape[0]
    a = a_norm.astype(jnp.float32)[:n, :n]

    def bdot(a_, b_):
        return jnp.dot(a_.astype(jnp.bfloat16), b_.astype(jnp.bfloat16),
                       preferred_element_type=jnp.float32)

    xw1 = bdot(x, w1)
    xwl = bdot(x, wlx).astype(jnp.bfloat16).astype(jnp.float32)
    h = jnp.maximum(bdot(a, xw1) + b1, 0.0)
    z = jnp.maximum(xwl + bdot(h, wlh) + bl, 0.0)
    m = jnp.maximum(bdot(z, wm1) + bm1, 0.0)
    m = jnp.maximum(bdot(m, wm2) + bm2, 0.0)
    return bdot(m, wm3) + bm3


if __name__ == "__main__":
    # Small shapes consistent with the module's forward (original real shapes:
    # node_features=26288, input_size=205, num_classes=2).
    N = 384            # number of graph nodes
    NODE_FEATURES = 384
    INPUT_SIZE = 32    # -> MLP hidden sizes 16, 8
    NUM_CLASSES = 2

    # Small tiles so every grid axis (pass-1 rows/K, pass-2 rows/A-columns)
    # takes >1 step; at real shapes use the defaults (tm1=1024, tk=512,
    # tm2=256, tn=2048).
    TM1, TK, TM2, TN = 128, 128, 128, 128

    key = jax.random.PRNGKey(0)
    k_x, k_e, k_w, k_p = jax.random.split(key, 4)

    # Node features [N, F]
    x = jax.random.normal(k_x, (N, NODE_FEATURES), jnp.float32)

    # Deterministic graph: ring edges + random edges, random positive weights.
    ring_src = jnp.arange(N, dtype=jnp.int32)
    ring_dst = (ring_src + 1) % N
    rand_src = jax.random.randint(k_e, (4 * N,), 0, N, dtype=jnp.int32)
    rand_dst = jax.random.randint(jax.random.fold_in(k_e, 1), (4 * N,), 0, N,
                                  dtype=jnp.int32)
    edge_index = jnp.stack([jnp.concatenate([ring_src, rand_src]),
                            jnp.concatenate([ring_dst, rand_dst])], axis=0)
    edge_weight = jax.random.uniform(k_w, (edge_index.shape[1],), jnp.float32,
                                     0.1, 1.0)

    # Build A_norm already padded + bf16 (no wrapper-side O(N^2) cast pass).
    _, _, _, n_pad = plan_row_tiles(N, TM1, TM2, TN)
    a_norm = build_norm_adj(edge_index, edge_weight, N, n_pad=n_pad)
    params = init_params(k_p, NODE_FEATURES, INPUT_SIZE, NUM_CLASSES)

    out = gcn_forward(x, a_norm, params, tm1=TM1, tk=TK, tm2=TM2, tn=TN)
    out = jax.block_until_ready(out)

    ref = reference_forward(x, a_norm, params)
    assert out.shape == (N, NUM_CLASSES)
    max_err = float(jnp.max(jnp.abs(out - ref)))
    assert jnp.allclose(out, ref, atol=1e-2, rtol=1e-2), \
        f"mismatch vs reference (max abs err {max_err})"

    print("KERNEL_OK")
</pallas_src>

<mosaic_0001>
module attributes {stable_mosaic.version = 11 : i64} {
  func.func @xw_kernel(%arg0: i32, %arg1: i32, %arg2: memref<128x128xf32, #tpu.memory_space<vmem>>, %arg3: memref<128x256xbf16, #tpu.memory_space<vmem>>, %arg4: memref<128x128xbf16, #tpu.memory_space<vmem>>, %arg5: memref<128x128xbf16, #tpu.memory_space<vmem>>, %arg6: memref<128x256xf32, #tpu.memory_space<vmem>>) attributes {dimension_semantics = [#tpu.dimension_semantics<parallel>, #tpu.dimension_semantics<arbitrary>], iteration_bounds = array<i64: 3, 3>, scalar_prefetch = 0 : i64, scratch_operands = 1 : i64, tpu.core_type = #tpu.core_type<tc>, window_params = [{transform_indices = @transform_0, window_bounds = array<i64: 128, 128>}, {transform_indices = @transform_1, window_bounds = array<i64: 128, 256>}, {transform_indices = @transform_2, window_bounds = array<i64: 128, 128>}, {transform_indices = @transform_3, window_bounds = array<i64: 128, 128>}]} {
    %c0_i32 = arith.constant 0 : i32
    %0 = arith.cmpi eq, %arg1, %c0_i32 : i32
    %1 = arith.extui %0 : i1 to i32
    %c0_i32_0 = arith.constant 0 : i32
    %2 = arith.cmpi ne, %1, %c0_i32_0 : i32
    scf.if %2 {
      %cst_9 = arith.constant 0.000000e+00 : f32
      %13 = vector.broadcast %cst_9 : f32 to vector<128x256xf32>
      %c0_10 = arith.constant 0 : index
      %c0_11 = arith.constant 0 : index
      %14 = vector.load %arg6[%c0_10, %c0_11] : memref<128x256xf32, #tpu.memory_space<vmem>>, vector<128x256xf32>
      tpu.vector_store %arg6[%c0_10, %c0_11], %13 {strides = array<i32>} : memref<128x256xf32, #tpu.memory_space<vmem>>, vector<128x256xf32>,
    } else {
    }
    %c0 = arith.constant 0 : index
    %c0_1 = arith.constant 0 : index
    %3 = vector.load %arg6[%c0, %c0_1] : memref<128x256xf32, #tpu.memory_space<vmem>>, vector<128x256xf32>
    %c0_2 = arith.constant 0 : index
    %c0_3 = arith.constant 0 : index
    %4 = vector.load %arg2[%c0_2, %c0_3] : memref<128x128xf32, #tpu.memory_space<vmem>>, vector<128x128xf32>
    %5 = arith.truncf %4 : vector<128x128xf32> to vector<128x128xbf16>
    %c0_4 = arith.constant 0 : index
    %c0_5 = arith.constant 0 : index
    %6 = vector.load %arg3[%c0_4, %c0_5] : memref<128x256xbf16, #tpu.memory_space<vmem>>, vector<128x256xbf16>
    %cst = arith.constant dense<0.000000e+00> : vector<128x256xf32>
    %7 = tpu.matmul %5, %6, %cst {dimension_numbers = #tpu.dot_dimension_numbers<[1], [0], [0], [1], [0, 0, 1, 1], [], []>} : vector<128x128xbf16>, vector<128x256xbf16>, vector<128x256xf32> -> vector<128x256xf32>
    %8 = arith.addf %3, %7 : vector<128x256xf32>
    %c0_6 = arith.constant 0 : index
    %c0_7 = arith.constant 0 : index
    %9 = vector.load %arg6[%c0_6, %c0_7] : memref<128x256xf32, #tpu.memory_space<vmem>>, vector<128x256xf32>
    tpu.vector_store %arg6[%c0_6, %c0_7], %8 {strides = array<i32>} : memref<128x256xf32, #tpu.memory_space<vmem>>, vector<128x256xf32>,
    %c2_i32 = arith.constant 2 : i32
    %10 = arith.cmpi eq, %arg1, %c2_i32 : i32
    %11 = arith.extui %10 : i1 to i32
    %c0_i32_8 = arith.constant 0 : i32
    %12 = arith.cmpi ne, %11, %c0_i32_8 : i32
    scf.if %12 {
      %c0_9 = arith.constant 0 : index
      %c0_10 = arith.constant 0 : index
      %13 = vector.load %arg6[%c0_9, %c0_10] : memref<128x256xf32, #tpu.memory_space<vmem>>, vector<128x128xf32>
      %14 = arith.truncf %13 : vector<128x128xf32> to vector<128x128xbf16>
      %c0_11 = arith.constant 0 : index
      %c0_12 = arith.constant 0 : index
      %15 = vector.load %arg4[%c0_11, %c0_12] : memref<128x128xbf16, #tpu.memory_space<vmem>>, vector<128x128xbf16>
      tpu.vector_store %arg4[%c0_11, %c0_12], %14 {strides = array<i32>} : memref<128x128xbf16, #tpu.memory_space<vmem>>, vector<128x128xbf16>,
      %c0_13 = arith.constant 0 : index
      %c128 = arith.constant 128 : index
      %16 = vector.load %arg6[%c0_13, %c128] : memref<128x256xf32, #tpu.memory_space<vmem>>, vector<128x128xf32>
      %17 = arith.truncf %16 : vector<128x128xf32> to vector<128x128xbf16>
      %c0_14 = arith.constant 0 : index
      %c0_15 = arith.constant 0 : index
      %18 = vector.load %arg5[%c0_14, %c0_15] : memref<128x128xbf16, #tpu.memory_space<vmem>>, vector<128x128xbf16>
      tpu.vector_store %arg5[%c0_14, %c0_15], %17 {strides = array<i32>} : memref<128x128xbf16, #tpu.memory_space<vmem>>, vector<128x128xbf16>,
    } else {
    }
    return
  }
  func.func @transform_0(%arg0: i32, %arg1: i32) -> (i32, i32) {
    %c0_i32 = arith.constant 0 : i32
    return %arg0, %arg1 : i32, i32
  }
  func.func @transform_1(%arg0: i32, %arg1: i32) -> (i32, i32) {
    %c0_i32 = arith.constant 0 : i32
    %c0_i32_0 = arith.constant 0 : i32
    return %arg1, %c0_i32 : i32, i32
  }
  func.func @transform_2(%arg0: i32, %arg1: i32) -> (i32, i32) {
    %c0_i32 = arith.constant 0 : i32
    %c0_i32_0 = arith.constant 0 : i32
    return %arg0, %c0_i32 : i32, i32
  }
  func.func @transform_3(%arg0: i32, %arg1: i32) -> (i32, i32) {
    %c0_i32 = arith.constant 0 : i32
    %c0_i32_0 = arith.constant 0 : i32
    return %arg0, %c0_i32 : i32, i32
  }
}

</mosaic_0001>

<bundles_post_ra>
// kernel: tpu_custom_call.1
= control target key start
LH: loop header
LB: loop body
LE: loop exit
PB: predicated region body
PF: predicated region fallthrough
CT: control target
= control target key end

     0   :  { %s2116_s0 = inlined_call_operand.hbm [shape: f32[384,384], index: 0, kind: input, shape index: {}]   ;;  %s2117_s1 = inlined_call_operand.hbm [shape: bf16[384,256], index: 1, kind: input, shape index: {}]   ;;  %s2118_s2 = inlined_call_operand.hbm [shape: bf16[384,128], index: 2, kind: output, shape index: {0}]   ;;  %s2119_s3 = inlined_call_operand.hbm [shape: bf16[384,128], index: 3, kind: output, shape index: {1}]  }
   0x1   :  { %2134 = sst [smem:[#allocation20_spill]] %s2116_s0 }
   0x2   :  { %2135 = sst [smem:[#allocation21_spill]] %s2117_s1 }
   0x3   :  { %2136 = sst [smem:[#allocation22_spill]] %s2118_s2 }
   0x4   :  { %2137 = sst [smem:[#allocation23_spill]] %s2119_s3 }
   0x5   :  { %9 = vsyncpa [#allocation4], 0 }
   0x6   :  { %11 = vsyncpa [#allocation4 + $0x1], 0 }
   0x7   :  { %12 = vsyncpa [#allocation7], 0 }
   0x8   :  { %14 = vsyncpa [#allocation7 + $0x1], 0 }
   0x9   :  { %15 = vsyncpa [#allocation5], 0 }
   0xa   :  { %17 = vsyncpa [#allocation5 + $0x1], 0 }
   0xb   :  { %18 = vsyncpa [#allocation10], 0 }
   0xc   :  { %20 = vsyncpa [#allocation10 + $0x1], 0  ;;  %s1663_s12 = smov 0   ;;  %s1665_s13 = smov 0  }
   0xd   :  { %s1667_s14 = smov 0   ;;  %s1669_s15 = smov 0  }
   0xe   :  { %s1671_s16 = smov 0   ;;  %s1673_s17 = smov 0  }
   0xf   :  { %s1675_s18 = smov 0   ;;  %s1677_s19 = smov 0  }
  0x10   :  { %s1679_s20 = smov 0   ;;  %s1681_s21 = smov 0  }
  0x11   :  { %s1683_s22 = smov 0   ;;  %s1685_s23 = smov 0  }
  0x12   :  { %s1687_s24 = smov 0   ;;  %s1689_s25 = smov 0  }
  0x13 LB: > { %2138 = sst [smem:[#allocation15_spill]] %s1618_s22  ;;  %s35_s26 = sadd.s32 1, %s1622_s23  ;;  %s1630_s25 = sphi %s1689_s25, %s26_s25   ;;  %s1626_s24 = sphi %s1687_s24, %s2171_s24   ;;  %s1622_s23 = sphi %s1685_s23, %s2170_s23   ;;  %s1618_s22 = sphi %s1683_s22, %s2169_s22   ;;  %s1614_s21 = sphi %s1681_s21, %s2168_s21   ;;  %s1610_s20 = sphi %s1679_s20, %s2180_s20   ;;  %s1606_s19 = sphi %s1677_s19, %s2179_s19   ;;  %s1602_s18 = sphi %s1675_s18, %s2178_s18   ;;  %s1598_s17 = sphi %s1673_s17, %s2177_s17   ;;  %s1594_s16 = sphi %s1671_s16, %s2176_s16   ;;  %s1590_s15 = sphi %s1669_s15, %s2175_s15   ;;  %s1586_s14 = sphi %s1667_s14, %s2174_s14   ;;  %s1582_s13 = sphi %s1665_s13, %s2173_s13   ;;  %s1578_s12 = sphi %s1663_s12, %s2172_s12  }
  0x14   : > { %2139 = sst [smem:[#allocation16_spill]] %s1622_s23  ;;  %s38_s27 = sadd.s32 1, %s1626_s24 }
  0x15   : > { %2140 = sst [smem:[#allocation17_spill]] %s1626_s24  ;;  %p36_p0 = scmp.ge.s32.totalorder %s35_s26, 3 }
  0x16   : > { %s47_s28 = sadd.s32 1, %s1610_s20  ;;  %p54_p1 = scmp.ne.s32.totalorder %s1610_s20, %s1606_s19 }
  0x17   : > { %p2126_p2 = scmp.eq.s32.totalorder %s1630_s25, 0  ;;  %s2182_s26 = smov (%p36_p0, %s35_s26), 0 }
  0x18   : > { %2141 = sst [smem:[#allocation18_spill]] %s2182_s26  ;;  %s2184_s27 = smov (!%p36_p0, %s38_s27), %s1626_s24 }
  0x19   : > { %s1744_s29 = ssub.s32 %s1622_s23, %s2182_s26  ;;  %p1748_p3 = por %p2126_p2, %p54_p1 }
  0x1a   : > { %p40_p4 = scmp.ge.s32.totalorder %s2184_s27, 3  ;;  %s99_s4 = sadd.s32 1, %s1586_s14 }
  0x1b   : > { %p2125_p7 = scmp.lt.s32.totalorder %s1630_s25, 9  ;;  %s162_s6 = sand.u32 1, %s1610_s20  }
  0x1c   : > { %s2186_s27 = smov (%p40_p4, %s2184_s27), 0  ;;  %s1003_s10 = sshll.u32 %s162_s6, 7 }
  0x1d   : > { %2143 = sst [smem:[#allocation19_spill]] %s2186_s27  ;;  %s42_s5 = ssub.s32 %s1626_s24, %s2186_s27 }
  0x1e   : > { %s44_s7 = sor.u32 %s1744_s29, %s42_s5  ;;  %p97_p8 = scmp.eq.s32.totalorder %s42_s5, 0 }
  0x1f   : > { %p45_p9 = scmp.eq.s32.totalorder %s44_s7, 0  ;;  %s1220_s11 = smul.u32 48, %s1626_s24 }
  0x20   : > { %s1764_s8 = scalar_select %p97_p8, %s1586_s14, %s99_s4  }
  0x21   : > { %s1767_s9 = scalar_select %p45_p9, %s1610_s20, %s47_s28  }
  0x22   : > { %p1774_p10 = pnand %p2125_p7, %p1748_p3  ;;  %s172_s27 = sadd.s32 %s1622_s23, %s1220_s11 }
  0x23   : > { %s166_s3 = scalar_lea.vmem [#allocation3], %s1003_s10  ;;  %s1006_s22 = sshll.u32 %s172_s27, 7 }
  0x24   : > { %s175_s2 = sshll.u32 %s166_s3, 4  ;;  %s2145_s0 = sld [smem:[#allocation20_spill]]  ;;  %s1779_s2 = int_to_ptr.vmem [resolvable:$true] %s175_s2 }
  0x25   : > { %p1011_p11 = scmp.ge.s32.totalorder %s1630_s25, 1  ;;  %s1787_s30 = scalar_lea.sflag [#allocation4], %s162_s6 }
  0x26   : > { %p1390_p13 = pneg %p1774_p10 }
  0x2a   : > { %s1784_s28 = scalar_lea.hbm %s2145_s0, %s1006_s22  ;;  %s1393_s22 = scalar_lea.hbm %s2145_s0, 18432 }
  0x2b   : > { %s1388_s7 = scalar_lea.hbm %s1784_s28, 2048  ;;  %p1394_p3 = scmp.lt.u32.totalorder %s1784_s28, %s2145_s0 }
  0x2c   : > { %p1389_p12 = scmp.ne.s32.totalorder %s1784_s28, %s1388_s7  ;;  %p1395_p4 = scmp.lt.u32.totalorder %s1393_s22, %s1388_s7 }
  0x2d   : > { %p1397_p9 = scmp.lt.u32.totalorder %s1388_s7, %s1784_s28 }
  0x2e   : > { %p1391_p0 = pnand %p1390_p13, %p1389_p12  ;;  %p1396_p8 = por %p1395_p4, %p1394_p3 }
  0x30   : > { %p1392_p1 = pneg %p1391_p0  ;;  %p1398_p7 = por %p1397_p9, %p1396_p8 }
  0x32   : > { %p1399_p2 = pnand %p1398_p7, %p1392_p1 }
  0x34   : > { %1402 = shalt.err (!%p1399_p2)
}
  0x35   : > { %s1403_s6 = scalar_lea.vmem %s1779_s2, 2048  ;;  %s1632_s4 = smov [#allocation3]  }
  0x36   : > { %p1404_p12 = scmp.ne.s32.totalorder %s1779_s2, %s1403_s6  ;;  %s1408_s5 = sshll.u32 %s1632_s4, 4  ;;  %s1409_s5 = int_to_ptr.vmem [resolvable:$false] %s1408_s5 }
  0x37   : > { %s1410_s3 = scalar_lea.vmem %s1409_s5, 4096  ;;  %p1411_p6 = scmp.lt.s32.totalorder %s1779_s2, %s1409_s5 }
  0x38   : > { %p1406_p0 = pnand %p1404_p12, %p1390_p13  ;;  %p1412_p3 = scmp.lt.s32.totalorder %s1410_s3, %s1403_s6 }
  0x3a   : > { %p1407_p5 = pneg %p1406_p0  ;;  %p1413_p4 = por %p1412_p3, %p1411_p6 }
  0x3c   : > { %p1414_p8 = pnand %p1413_p4, %p1407_p5 }
  0x3e   : > { %1417 = shalt.err (!%p1414_p8)
}
  0x3f   : > { %s1633_s7 = smov 384   ;;  %s2127_s27 = smov 128  }
  0x40   : > { %s2128_s22 = smov 8   ;;  %p205_p2 = scmp.lt.s32.totalorder %s1630_s25, 10 }
  0x41   : > { %1232 = dma.hbm_to_vmem [thread:$0]  (!%p1774_p10), %s1784_s28, 2048, %s1779_s2, %s1787_s30, %s1633_s7, %s2127_s27, %s2128_s22  }
  0x42   : > { %p1820_p5 = pnand %p1011_p11, %p205_p2  ;;  %s999_s11 = sadd.s32 4294967295, %s1630_s25  }
  0x43   : > { %s1000_s6 = sadd.s32 4294967294, %s1630_s25   ;;  %p61_p6 = scmp.eq.s32.totalorder %s999_s11, 0 }
  0x44   : > { %s73_s4 = sadd.s32 1, %s1598_s17  ;;  %p2147_p7 = scmp.eq.s32.totalorder %s1744_s29, 0 }
  0x45   : > { %p2148_p13 = scmp.ne.s32.totalorder %s1606_s19, %s1602_s18  ;;  %p80_p10 = scmp.ne.s32.totalorder %s1598_s17, %s1594_s16 }
  0x46   : > { %s1830_s5 = scalar_select %p2147_p7, %s1598_s17, %s73_s4  }
  0x47   : > { %p1835_p1 = por %p61_p6, %p2148_p13  ;;  %p86_p11 = scmp.ne.s32.totalorder %s1594_s16, %s1590_s15 }
  0x48   : > { %p109_p9 = scmp.ne.s32.totalorder %s1586_s14, %s1582_s13  ;;  %p2150_p12 = scmp.eq.s32.totalorder %s1630_s25, 0 }
  0x49   : > { %s2149_s26 = scalar_select %p1835_p1, 1, 0 }
  0x4a   : > { %p82_p0 = por %p80_p10, %p2150_p12  ;;  %p110_p3 = scmp.eq.s32.totalorder %s999_s11, 8 }
  0x4b   : > { %p1847_p4 = por %p86_p11, %p61_p6  ;;  %p115_p8 = scmp.ne.s32.totalorder %s1582_s13, %s1578_s12 }
  0x4c   : > { %p1853_p2 = por %p110_p3, %p109_p9  ;;  %p116_p7 = scmp.eq.s32.totalorder %s1000_s6, 8 }
  0x4d   : > { %s2151_s2 = scalar_select %p1847_p4, 1, 0 }
  0x4e   : > { %s2152_s29 = scalar_select %p1853_p2, 1, 0 }
  0x4f   : > { %s185_s18 = sand.u32 1, %s1598_s17   ;;  %s1075_s28 = sshll.u32 %s1622_s23, 11 }
  0x50   : > { %p1859_p13 = por %p116_p7, %p115_p8  ;;  %s1007_s15 = sshll.u32 %s185_s18, 7 }
  0x51   : > { %s2154_s1 = sld [smem:[#allocation21_spill]]  ;;  %p2155_p6 = scmp.lt.s32.totalorder %s1630_s25, 9 }
  0x52   : > { %s2153_s30 = scalar_select %p1859_p13, 1, 0 }
  0x53   : > { %p1870_p10 = pnand %p2155_p6, %p82_p0  ;;  %s189_s6 = scalar_lea.vmem [#allocation6], %s1007_s15 }
  0x54   : > { %s197_s27 = sshll.u32 %s189_s6, 4  ;;  %s1876_s22 = scalar_lea.sflag [#allocation7], %s185_s18  ;;  %s1874_s27 = int_to_ptr.vmem [resolvable:$true] %s197_s27 }
  0x55   : > { %p1420_p9 = pneg %p1870_p10 }
  0x57   : > { %s1866_s11 = scalar_lea.hbm %s2154_s1, %s1075_s28  ;;  %s1423_s0 = scalar_lea.hbm %s2154_s1, 6144 }
  0x58   : > { %s1418_s3 = scalar_lea.hbm %s1866_s11, 2048  ;;  %p1424_p0 = scmp.lt.u32.totalorder %s1866_s11, %s2154_s1 }
  0x59   : > { %p1419_p11 = scmp.ne.s32.totalorder %s1866_s11, %s1418_s3  ;;  %p1425_p8 = scmp.lt.u32.totalorder %s1423_s0, %s1418_s3 }
  0x5a   : > { %p1427_p6 = scmp.lt.u32.totalorder %s1418_s3, %s1866_s11 }
  0x5b   : > { %p1421_p12 = pnand %p1420_p9, %p1419_p11  ;;  %p1426_p7 = por %p1425_p8, %p1424_p0 }
  0x5d   : > { %p1422_p3 = pneg %p1421_p12  ;;  %p1428_p13 = por %p1427_p6, %p1426_p7 }
  0x5f   : > { %p1429_p2 = pnand %p1428_p13, %p1422_p3 }
  0x61   : > { %1432 = shalt.err (!%p1429_p2)
}
  0x62   : > { %s1433_s18 = scalar_lea.vmem %s1874_s27, 2048  ;;  %s1636_s15 = smov [#allocation6]  }
  0x63   : > { %p1434_p11 = scmp.ne.s32.totalorder %s1874_s27, %s1433_s18  ;;  %s1438_s6 = sshll.u32 %s1636_s15, 4  ;;  %s1439_s6 = int_to_ptr.vmem [resolvable:$false] %s1438_s6 }
  0x64   : > { %s1440_s23 = scalar_lea.vmem %s1439_s6, 4096  ;;  %p1441_p1 = scmp.lt.s32.totalorder %s1874_s27, %s1439_s6 }
  0x65   : > { %p1436_p12 = pnand %p1434_p11, %p1420_p9  ;;  %p1442_p0 = scmp.lt.s32.totalorder %s1440_s23, %s1433_s18 }
  0x67   : > { %p1437_p4 = pneg %p1436_p12  ;;  %p1443_p8 = por %p1442_p0, %p1441_p1 }
  0x69   : > { %p1444_p7 = pnand %p1443_p8, %p1437_p4 }
  0x6b   : > { %1447 = shalt.err (!%p1444_p7)
}
  0x6c   : > { %s2157_s0 = smov 8   ;;  %s2158_s24 = smov 128  }
  0x6d   : > { %1235 = dma.hbm_to_vmem [thread:$0]  (!%p1870_p10), %s1866_s11, 2048, %s1874_s27, %s1876_s22, %s2158_s24, %s2158_s24, %s2157_s0  }
  0x6e   : > { %209 = sbr.rel (%p1820_p5) target bundleno = 479 (0x1df), region = 28  ;;  %s211_s3 = sand.u32 (!%p1820_p5), 1, %s1606_s19  }
  0x6f   : > { %s1012_s28 = sshll.u32 (!%p1820_p5), %s211_s3, 7  ;;  %s212_s7 = scalar_lea.sflag (!%p1820_p5), [#allocation4], %s211_s3 }
  0x70   : > { %s1910_s18 = scalar_lea.vmem (!%p1820_p5), [#allocation3], %s1012_s28  ;;  %p2159_p1 = scmp.ne.s32.totalorder (!%p1820_p5), %s2149_s26, 0 }
  0x75   : > { %1561 = dma.done.wait (%p2159_p1), %s212_s7, 2048  }
  0x76   : > { %1563 = vsyncadd (%p2159_p1), %s212_s7, 4294965248  ;;  %s220_s4 = sand.u32 1, %s1594_s16   ;;  %p2160_p5 = scmp.ne.s32.totalorder %s2151_s2, 0 }
  0x77   : > { %s1013_s15 = sshll.u32 %s220_s4, 7  ;;  %s221_s27 = scalar_lea.sflag [#allocation7], %s220_s4 }
  0x78   : > { %s1917_s22 = scalar_lea.vmem [#allocation6], %s1013_s15 }
  0x79   : > { %1565 = dma.done.wait (%p2160_p5), %s221_s27, 2048  }
  0x7a   : > { %1567 = vsyncadd (%p2160_p5), %s221_s27, 4294965248  ;;  %s1924_s10 = sand.u32 1, %s1582_s13   ;;  %p1016_p4 = scmp.ne.s32.totalorder %s1614_s21, 0 }
  0x7b   : > { %s1014_s11 = sshll.u32 %s1924_s10, 6  ;;  %v1637_v0 = vmov (!%p1016_p4), 0.0  }
  0x7c   : > { %s1927_s6 = scalar_lea.vmem [#allocation8], %s1014_s11  ;;  %s1929_s26 = scalar_lea.vmem [#allocation9], %s1014_s11  ;;  %266 = vst [vmem:[#allocation2] sm:$0xff] (!%p1016_p4), %v1637_v0  ;;  %267 = vst [vmem:[#allocation2 + $0x8] sm:$0xff] (!%p1016_p4), %v1637_v0 }
  0x7d   : > { %265 = sbr.rel (%p1016_p4) target bundleno = 140 (0x8c), region = 40  ;;  %268 = vst [vmem:[#allocation2 + $0x10] sm:$0xff] (!%p1016_p4), %v1637_v0  ;;  %269 = vst [vmem:[#allocation2 + $0x18] sm:$0xff] (!%p1016_p4), %v1637_v0 }
  0x7e   : > { %270 = vst [vmem:[#allocation2 + $0x20] sm:$0xff] (!%p1016_p4), %v1637_v0  ;;  %271 = vst [vmem:[#allocation2 + $0x28] sm:$0xff] (!%p1016_p4), %v1637_v0 }
  0x7f   : > { %272 = vst [vmem:[#allocation2 + $0x30] sm:$0xff] (!%p1016_p4), %v1637_v0  ;;  %273 = vst [vmem:[#allocation2 + $0x38] sm:$0xff] (!%p1016_p4), %v1637_v0 }
  0x80   : > { %274 = vst [vmem:[#allocation2 + $0x40] sm:$0xff] (!%p1016_p4), %v1637_v0  ;;  %275 = vst [vmem:[#allocation2 + $0x48] sm:$0xff] (!%p1016_p4), %v1637_v0 }
  0x81   : > { %276 = vst [vmem:[#allocation2 + $0x50] sm:$0xff] (!%p1016_p4), %v1637_v0  ;;  %277 = vst [vmem:[#allocation2 + $0x58] sm:$0xff] (!%p1016_p4), %v1637_v0 }
  0x82   : > { %278 = vst [vmem:[#allocation2 + $0x60] sm:$0xff] (!%p1016_p4), %v1637_v0  ;;  %279 = vst [vmem:[#allocation2 + $0x68] sm:$0xff] (!%p1016_p4), %v1637_v0 }
  0x83   : > { %280 = vst [vmem:[#allocation2 + $0x70] sm:$0xff] (!%p1016_p4), %v1637_v0  ;;  %281 = vst [vmem:[#allocation2 + $0x78] sm:$0xff] (!%p1016_p4), %v1637_v0 }
  0x84   : > { %282 = vst [vmem:[#allocation2 + $0x80] sm:$0xff] %v1637_v0  ;;  %283 = vst [vmem:[#allocation2 + $0x88] sm:$0xff] %v1637_v0 }
  0x85   : > { %284 = vst [vmem:[#allocation2 + $0x90] sm:$0xff] %v1637_v0  ;;  %285 = vst [vmem:[#allocation2 + $0x98] sm:$0xff] %v1637_v0 }
  0x86   : > { %286 = vst [vmem:[#allocation2 + $0xa0] sm:$0xff] %v1637_v0  ;;  %287 = vst [vmem:[#allocation2 + $0xa8] sm:$0xff] %v1637_v0 }
  0x87   : > { %288 = vst [vmem:[#allocation2 + $0xb0] sm:$0xff] %v1637_v0  ;;  %289 = vst [vmem:[#allocation2 + $0xb8] sm:$0xff] %v1637_v0 }
  0x88   : > { %290 = vst [vmem:[#allocation2 + $0xc0] sm:$0xff] %v1637_v0  ;;  %291 = vst [vmem:[#allocation2 + $0xc8] sm:$0xff] %v1637_v0 }
  0x89   : > { %292 = vst [vmem:[#allocation2 + $0xd0] sm:$0xff] %v1637_v0  ;;  %293 = vst [vmem:[#allocation2 + $0xd8] sm:$0xff] %v1637_v0 }
  0x8a   : > { %294 = vst [vmem:[#allocation2 + $0xe0] sm:$0xff] %v1637_v0  ;;  %295 = vst [vmem:[#allocation2 + $0xe8] sm:$0xff] %v1637_v0 }
  0x8b   : > { %296 = vst [vmem:[#allocation2 + $0xf0] sm:$0xff] %v1637_v0  ;;  %297 = vst [vmem:[#allocation2 + $0xf8] sm:$0xff] %v1637_v0 }
  0x8c PF: > { %v1364_v1 = vld [vmem:[%s1917_s22 + $0x4] ss:$8 sps:$4 sm:$0xff]   ;;  %v1366_v2 = vld [vmem:[%s1917_s22] ss:$8 sps:$4 sm:$0xff]   ;;  %v1638_v3 = vmov 0   ;;  %v332_v24 = vld [vmem:[%s1910_s18 + $0x10] sm:$0xff] }
  0x8d   : > { %482 = vmatprep.mubr.bf16.mxu0 %v1638_v3  ;;  %522 = vmatprep.mubr.bf16.mxu1 %v1638_v3  ;;  %v1367_v4 = vld [vmem:[%s1917_s22 + $0x14] ss:$8 sps:$4 sm:$0xff]   ;;  %v1369_v5 = vld [vmem:[%s1917_s22 + $0x10] ss:$8 sps:$4 sm:$0xff]   ;;  %v1370_v6 = vld [vmem:[%s1917_s22 + $0x24] ss:$8 sps:$4 sm:$0xff]  }
  0x8e   : > { %450 = vmatprep.subr.bf16.mxu0 %v1364_v1  ;;  %1204 = vmatprep.subr.bf16.mxu1 %v1364_v1  ;;  %v1372_v7 = vld [vmem:[%s1917_s22 + $0x20] ss:$8 sps:$4 sm:$0xff]   ;;  %v1373_v8 = vld [vmem:[%s1917_s22 + $0x34] ss:$8 sps:$4 sm:$0xff]   ;;  %v1375_v9 = vld [vmem:[%s1917_s22 + $0x30] ss:$8 sps:$4 sm:$0xff]  }
  0x8f   : > { %451 = vmatpush1.bf16.msra.mxu0 %v1366_v2  ;;  %1212 = vmatpush1.bf16.msra.mxu1 %v1366_v2  ;;  %v1376_v10 = vld [vmem:[%s1917_s22 + $0x44] ss:$8 sps:$4 sm:$0xff]   ;;  %v1378_v11 = vld [vmem:[%s1917_s22 + $0x40] ss:$8 sps:$4 sm:$0xff]   ;;  %v1379_v12 = vld [vmem:[%s1917_s22 + $0x54] ss:$8 sps:$4 sm:$0xff]  }
  0x90   : > { %452 = vmatprep.subr.bf16.mxu0 %v1367_v4  ;;  %1205 = vmatprep.subr.bf16.mxu1 %v1367_v4  ;;  %v1381_v13 = vld [vmem:[%s1917_s22 + $0x50] ss:$8 sps:$4 sm:$0xff]   ;;  %v1382_v14 = vld [vmem:[%s1917_s22 + $0x64] ss:$8 sps:$4 sm:$0xff]   ;;  %v1384_v15 = vld [vmem:[%s1917_s22 + $0x60] ss:$8 sps:$4 sm:$0xff]  }
  0x91   : > { %v1385_v16 = vld [vmem:[%s1917_s22 + $0x74] ss:$8 sps:$4 sm:$0xff]   ;;  %v1387_v17 = vld [vmem:[%s1917_s22 + $0x70] ss:$8 sps:$4 sm:$0xff]   ;;  %v330_v18 = vld [vmem:[%s1910_s18] sm:$0xff]  ;;  %p1033_p2 = scmp.ne.s32.totalorder %s1614_s21, 2 }
  0x92   : > { %v331_v19 = vld [vmem:[%s1910_s18 + $0x8] sm:$0xff]  ;;  %v338_v20 = vld [vmem:[%s1910_s18 + $0x40] sm:$0xff]  ;;  %v333_v25 = vld [vmem:[%s1910_s18 + $0x18] sm:$0xff] }
  0x93   : > { %453 = vmatpush1.bf16.msra.mxu0 %v1369_v5  ;;  %1213 = vmatpush1.bf16.msra.mxu1 %v1369_v5  ;;  %v339_v21 = vld [vmem:[%s1910_s18 + $0x48] sm:$0xff]  ;;  %v346_v22 = vpack.c.bf16 %v331_v19, %v330_v18  ;;  %v340_v26 = vld [vmem:[%s1910_s18 + $0x50] sm:$0xff]  ;;  %v341_v27 = vld [vmem:[%s1910_s18 + $0x58] sm:$0xff]  ;;  %v347_v28 = vpack.c.bf16 %v333_v25, %v332_v24 }
  0x94   : > { %454 = vmatprep.subr.bf16.mxu0 %v1370_v6  ;;  %1206 = vmatprep.subr.bf16.mxu1 %v1370_v6  ;;  %v350_v23 = vpack.c.bf16 %v339_v21, %v338_v20  ;;  %v351_v29 = vpack.c.bf16 %v341_v27, %v340_v26  ;;  %v334_v30 = vld [vmem:[%s1910_s18 + $0x20] sm:$0xff]  ;;  %v335_v31 = vld [vmem:[%s1910_s18 + $0x28] sm:$0xff]  ;;  %v336_v36 = vld [vmem:[%s1910_s18 + $0x30] sm:$0xff] }
  0x95   : > { %v342_v32 = vld [vmem:[%s1910_s18 + $0x60] sm:$0xff]  ;;  %v343_v33 = vld [vmem:[%s1910_s18 + $0x68] sm:$0xff]  ;;  %v348_v34 = vpack.c.bf16 %v335_v31, %v334_v30  ;;  %v337_v37 = vld [vmem:[%s1910_s18 + $0x38] sm:$0xff] }
  0x96   : > { %v352_v35 = vpack.c.bf16 %v343_v33, %v342_v32  ;;  %v344_v38 = vld [vmem:[%s1910_s18 + $0x70] sm:$0xff]  ;;  %v345_v39 = vld [vmem:[%s1910_s18 + $0x78] sm:$0xff]  ;;  %v349_v40 = vpack.c.bf16 %v337_v37, %v336_v36  ;;  %v298_v42 = vld [vmem:[#allocation2] sm:$0xff] }
  0x97   : > { %455 = vmatpush1.bf16.msra.mxu0 %v1372_v7  ;;  %1214 = vmatpush1.bf16.msra.mxu1 %v1372_v7  ;;  %v353_v41 = vpack.c.bf16 %v345_v39, %v344_v38  ;;  %v314_v43 = vld [vmem:[#allocation2 + $0x80] sm:$0xff]  ;;  %v299_v44 = vld [vmem:[#allocation2 + $0x8] sm:$0xff]  ;;  %v300_v48 = vld [vmem:[#allocation2 + $0x10] sm:$0xff] }
  0x98   : > { %456 = vmatprep.subr.bf16.mxu0 %v1373_v8  ;;  %1207 = vmatprep.subr.bf16.mxu1 %v1373_v8  ;;  %v315_v45 = vld [vmem:[#allocation2 + $0x88] sm:$0xff]  ;;  %v316_v49 = vld [vmem:[#allocation2 + $0x90] sm:$0xff]  ;;  %v301_v54 = vld [vmem:[#allocation2 + $0x18] sm:$0xff] }
  0x99   : > { %v317_v55 = vld [vmem:[#allocation2 + $0x98] sm:$0xff]  ;;  %v302_v2 = vld [vmem:[#allocation2 + $0x20] sm:$0xff]  ;;  %v303_v4 = vld [vmem:[#allocation2 + $0x28] sm:$0xff] }
  0x9a   : > { %v319_v5 = vld [vmem:[#allocation2 + $0xa8] sm:$0xff]  ;;  %v304_v8 = vld [vmem:[#allocation2 + $0x30] sm:$0xff]  ;;  %v306_v26 = vld [vmem:[#allocation2 + $0x40] sm:$0xff] }
  0x9b   : > { %457 = vmatpush1.bf16.msra.mxu0 %v1375_v9  ;;  %1215 = vmatpush1.bf16.msra.mxu1 %v1375_v9  ;;  %v320_v9 = vld [vmem:[#allocation2 + $0xb0] sm:$0xff]  ;;  %v322_v27 = vld [vmem:[#allocation2 + $0xc0] sm:$0xff]  ;;  %v309_v38 = vld [vmem:[#allocation2 + $0x58] sm:$0xff] }
  0x9c   : > { %458 = vmatprep.subr.bf16.mxu0 %v1376_v10  ;;  %1208 = vmatprep.subr.bf16.mxu1 %v1376_v10  ;;  %v308_v32 = vld [vmem:[#allocation2 + $0x50] sm:$0xff]  ;;  %v325_v39 = vld [vmem:[#allocation2 + $0xd8] sm:$0xff] }
  0x9d   : > { %v324_v33 = vld [vmem:[#allocation2 + $0xd0] sm:$0xff] }
  0x9f   : > { %459 = vmatpush1.bf16.msra.mxu0 %v1378_v11  ;;  %1216 = vmatpush1.bf16.msra.mxu1 %v1378_v11 }
  0xa0   : > { %460 = vmatprep.subr.bf16.mxu0 %v1379_v12  ;;  %1209 = vmatprep.subr.bf16.mxu1 %v1379_v12 }
  0xa3   : > { %461 = vmatpush1.bf16.msra.mxu0 %v1381_v13  ;;  %1217 = vmatpush1.bf16.msra.mxu1 %v1381_v13 }
  0xa4   : > { %462 = vmatprep.subr.bf16.mxu0 %v1382_v14  ;;  %1210 = vmatprep.subr.bf16.mxu1 %v1382_v14  ;;  %v305_v14 = vld [vmem:[#allocation2 + $0x38] sm:$0xff] }
  0xa7   : > { %463 = vmatpush1.bf16.msra.mxu0 %v1384_v15  ;;  %1218 = vmatpush1.bf16.msra.mxu1 %v1384_v15  ;;  %v321_v15 = vld [vmem:[#allocation2 + $0xb8] sm:$0xff] }
  0xa8   : > { %464 = vmatprep.subr.bf16.mxu0 %v1385_v16  ;;  %1211 = vmatprep.subr.bf16.mxu1 %v1385_v16 }
  0xab   : > { %465 = vmatpush1.bf16.msra.mxu0 %v1387_v17  ;;  %1219 = vmatpush1.bf16.msra.mxu1 %v1387_v17 }
  0xae   : > { %483 = vmatmul.mubr.bf16.vlgmr.msra.gmra.mrb[0].mxu0 %v346_v22  ;;  %523 = vmatmul.mubr.bf16.vlgmr.msra.gmra.mrb[0].mxu1 %v350_v23 }
  0xaf   : > { %492 = vmatprep.mubr.bf16.mxu0 %v1638_v3  ;;  %532 = vmatprep.mubr.bf16.mxu1 %v1638_v3 }
  0xb6   : > { %493 = vmatmul.mubr.bf16.gmra.mrb[4].mxu0 %v347_v28  ;;  %533 = vmatmul.mubr.bf16.gmra.mrb[4].mxu1 %v351_v29  ;;  %v307_v28 = vld [vmem:[#allocation2 + $0x48] sm:$0xff] }
  0xb7   : > { %502 = vmatprep.mubr.bf16.mxu0 %v1638_v3  ;;  %542 = vmatprep.mubr.bf16.mxu1 %v1638_v3  ;;  %v323_v29 = vld [vmem:[#allocation2 + $0xc8] sm:$0xff] }
  0xbe   : > { %503 = vmatmul.mubr.bf16.gmra.mrb[8].mxu0 %v348_v34  ;;  %543 = vmatmul.mubr.bf16.gmra.mrb[8].mxu1 %v352_v35 }
  0xbf   : > { %512 = vmatprep.mubr.bf16.mxu0 %v1638_v3  ;;  %552 = vmatprep.mubr.bf16.mxu1 %v1638_v3  ;;  %v318_v3 = vld [vmem:[#allocation2 + $0xa0] sm:$0xff] }
  0xc6   : > { %513 = vmatmul.mubr.bf16.gmra.mrb[12].mxu0 %v349_v40  ;;  %553 = vmatmul.mubr.bf16.gmra.mrb[12].mxu1 %v353_v41 }
 0x181   : > { %v484_v46 = vpop.f32.mrb[0].mxu0  ;;  %v524_v47 = vpop.f32.mrb[0].mxu1 }
 0x182   : > { %v563_v50 = vadd.f32 %v484_v46, %v298_v42  ;;  %v579_v51 = vadd.f32 %v524_v47, %v314_v43  ;;  %v486_v52 = vpop.f32.mrb[1].mxu0  ;;  %v526_v53 = vpop.f32.mrb[1].mxu1 }
 0x183   : > { %v564_v56 = vadd.f32 %v486_v52, %v299_v44  ;;  %v580_v57 = vadd.f32 %v526_v53, %v315_v45  ;;  %v488_v58 = vpop.f32.mrb[2].mxu0  ;;  %v528_v59 = vpop.f32.mrb[2].mxu1  ;;  %v311_v52 = vld [vmem:[#allocation2 + $0x68] sm:$0xff] }
 0x184   : > { %595 = vst [vmem:[#allocation2] sm:$0xff] %v563_v50  ;;  %611 = vst [vmem:[#allocation2 + $0x80] sm:$0xff] %v579_v51  ;;  %v565_v60 = vadd.f32 %v488_v58, %v300_v48  ;;  %v581_v61 = vadd.f32 %v528_v59, %v316_v49  ;;  %v490_v62 = vpop.f32.mrb[3].mxu0  ;;  %v530_v63 = vpop.f32.mrb[3].mxu1  ;;  %v310_v50 = vld [vmem:[#allocation2 + $0x60] sm:$0xff]  ;;  %v327_v53 = vld [vmem:[#allocation2 + $0xe8] sm:$0xff] }
 0x185   : > { %596 = vst [vmem:[#allocation2 + $0x8] sm:$0xff] %v564_v56  ;;  %612 = vst [vmem:[#allocation2 + $0x88] sm:$0xff] %v580_v57  ;;  %v566_v0 = vadd.f32 %v490_v62, %v301_v54  ;;  %v582_v1 = vadd.f32 %v530_v63, %v317_v55  ;;  %v326_v51 = vld [vmem:[#allocation2 + $0xe0] sm:$0xff]  ;;  %v312_v56 = vld [vmem:[#allocation2 + $0x70] sm:$0xff] }
 0x186   : > { %597 = vst [vmem:[#allocation2 + $0x10] sm:$0xff] %v565_v60  ;;  %613 = vst [vmem:[#allocation2 + $0x90] sm:$0xff] %v581_v61  ;;  %v328_v57 = vld [vmem:[#allocation2 + $0xf0] sm:$0xff]  ;;  %v313_v62 = vld [vmem:[#allocation2 + $0x78] sm:$0xff] }
 0x187   : > { %598 = vst [vmem:[#allocation2 + $0x18] sm:$0xff] %v566_v0  ;;  %614 = vst [vmem:[#allocation2 + $0x98] sm:$0xff] %v582_v1  ;;  %v329_v63 = vld [vmem:[#allocation2 + $0xf8] sm:$0xff] }
 0x189   : > { %v494_v6 = vpop.f32.mrb[4].mxu0  ;;  %v534_v7 = vpop.f32.mrb[4].mxu1 }
 0x18a   : > { %v567_v10 = vadd.f32 %v494_v6, %v302_v2  ;;  %v583_v11 = vadd.f32 %v534_v7, %v318_v3  ;;  %v496_v12 = vpop.f32.mrb[5].mxu0  ;;  %v536_v13 = vpop.f32.mrb[5].mxu1 }
 0x18b   : > { %v568_v16 = vadd.f32 %v496_v12, %v303_v4  ;;  %v584_v17 = vadd.f32 %v536_v13, %v319_v5  ;;  %v498_v18 = vpop.f32.mrb[6].mxu0  ;;  %v538_v19 = vpop.f32.mrb[6].mxu1 }
 0x18c   : > { %599 = vst [vmem:[#allocation2 + $0x20] sm:$0xff] %v567_v10  ;;  %615 = vst [vmem:[#allocation2 + $0xa0] sm:$0xff] %v583_v11  ;;  %v569_v20 = vadd.f32 %v498_v18, %v304_v8  ;;  %v585_v21 = vadd.f32 %v538_v19, %v320_v9  ;;  %v500_v22 = vpop.f32.mrb[7].mxu0  ;;  %v540_v23 = vpop.f32.mrb[7].mxu1  ;;  %v631_v10 = vld [vmem:[#allocation2] sm:$0xff] (!%p1033_p2) }
 0x18d   : > { %600 = vst [vmem:[#allocation2 + $0x28] sm:$0xff] %v568_v16  ;;  %616 = vst [vmem:[#allocation2 + $0xa8] sm:$0xff] %v584_v17  ;;  %v570_v24 = vadd.f32 %v500_v22, %v305_v14  ;;  %v586_v25 = vadd.f32 %v540_v23, %v321_v15  ;;  %v632_v11 = vld [vmem:[#allocation2 + $0x10] sm:$0xff] (!%p1033_p2) }
 0x18e   : > { %601 = vst [vmem:[#allocation2 + $0x30] sm:$0xff] %v569_v20  ;;  %617 = vst [vmem:[#allocation2 + $0xb0] sm:$0xff] %v585_v21  ;;  %v1113_v13 = vpack.c.bf16 (!%p1033_p2), %v632_v11, %v631_v10  ;;  %v639_v21 = vld [vmem:[#allocation2 + $0x80] sm:$0xff] (!%p1033_p2)  ;;  %v640_v23 = vld [vmem:[#allocation2 + $0x90] sm:$0xff] (!%p1033_p2) }
 0x18f   : > { %602 = vst [vmem:[#allocation2 + $0x38] sm:$0xff] %v570_v24  ;;  %618 = vst [vmem:[#allocation2 + $0xb8] sm:$0xff] %v586_v25 }
 0x190   : > { %1114 = vst [vmem:[%s1927_s6] sm:$0xff] (!%p1033_p2), %v1113_v13  }
 0x191   : > { %v504_v30 = vpop.f32.mrb[8].mxu0  ;;  %v544_v31 = vpop.f32.mrb[8].mxu1 }
 0x192   : > { %v571_v34 = vadd.f32 %v504_v30, %v306_v26  ;;  %v587_v35 = vadd.f32 %v544_v31, %v322_v27  ;;  %v506_v36 = vpop.f32.mrb[9].mxu0  ;;  %v546_v37 = vpop.f32.mrb[9].mxu1  ;;  %v1133_v26 = vpack.c.bf16 (!%p1033_p2), %v640_v23, %v639_v21 }
 0x193   : > { %v572_v40 = vadd.f32 %v506_v36, %v307_v28  ;;  %v588_v41 = vadd.f32 %v546_v37, %v323_v29  ;;  %v508_v42 = vpop.f32.mrb[10].mxu0  ;;  %v548_v43 = vpop.f32.mrb[10].mxu1  ;;  %v633_v12 = vld [vmem:[#allocation2 + $0x20] sm:$0xff] (!%p1033_p2) }
 0x194   : > { %603 = vst [vmem:[#allocation2 + $0x40] sm:$0xff] %v571_v34  ;;  %619 = vst [vmem:[#allocation2 + $0xc0] sm:$0xff] %v587_v35  ;;  %v573_v44 = vadd.f32 %v508_v42, %v308_v32  ;;  %v589_v45 = vadd.f32 %v548_v43, %v324_v33  ;;  %v510_v46 = vpop.f32.mrb[11].mxu0  ;;  %v550_v47 = vpop.f32.mrb[11].mxu1  ;;  %v641_v24 = vld [vmem:[#allocation2 + $0xa0] sm:$0xff] (!%p1033_p2)  ;;  %v727_v33 = vld [vmem:[#allocation2 + $0x8] sm:$0xff] (!%p1033_p2) }
 0x195   : > { %604 = vst [vmem:[#allocation2 + $0x48] sm:$0xff] %v572_v40  ;;  %620 = vst [vmem:[#allocation2 + $0xc8] sm:$0xff] %v588_v41  ;;  %v574_v48 = vadd.f32 %v510_v46, %v309_v38  ;;  %v590_v49 = vadd.f32 %v550_v47, %v325_v39  ;;  %v634_v14 = vld [vmem:[#allocation2 + $0x30] sm:$0xff] (!%p1033_p2)  ;;  %v728_v34 = vld [vmem:[#allocation2 + $0x18] sm:$0xff] (!%p1033_p2) }
 0x196   : > { %605 = vst [vmem:[#allocation2 + $0x50] sm:$0xff] %v573_v44  ;;  %621 = vst [vmem:[#allocation2 + $0xd0] sm:$0xff] %v589_v45  ;;  %v1118_v17 = vpack.c.bf16 (!%p1033_p2), %v634_v14, %v633_v12  ;;  %v642_v25 = vld [vmem:[#allocation2 + $0xb0] sm:$0xff] (!%p1033_p2)  ;;  %v1153_v36 = vpack.c.bf16 (!%p1033_p2), %v728_v34, %v727_v33  ;;  %v729_v37 = vld [vmem:[#allocation2 + $0x28] sm:$0xff] (!%p1033_p2) }
 0x197   : > { %606 = vst [vmem:[#allocation2 + $0x58] sm:$0xff] %v574_v48  ;;  %622 = vst [vmem:[#allocation2 + $0xd8] sm:$0xff] %v590_v49  ;;  %v1138_v27 = vpack.c.bf16 (!%p1033_p2), %v642_v25, %v641_v24  ;;  %v730_v38 = vld [vmem:[#allocation2 + $0x38] sm:$0xff] (!%p1033_p2)  ;;  %v735_v46 = vld [vmem:[#allocation2 + $0x88] sm:$0xff] (!%p1033_p2) }
 0x198   : > { %1190 = vst [vmem:[%s1927_s6 + $0x8] sm:$0xff] (!%p1033_p2), %v1118_v17   ;;  %1193 = vst [vmem:[%s1927_s6 + $0x20] sm:$0xff] (!%p1033_p2), %v1133_v26   ;;  %v1158_v40 = vpack.c.bf16 (!%p1033_p2), %v730_v38, %v729_v37  ;;  %v736_v47 = vld [vmem:[#allocation2 + $0x98] sm:$0xff] (!%p1033_p2)  ;;  %v737_v48 = vld [vmem:[#allocation2 + $0xa8] sm:$0xff] (!%p1033_p2) }
 0x199   : > { %v514_v54 = vpop.f32.mrb[12].mxu0  ;;  %v554_v55 = vpop.f32.mrb[12].mxu1  ;;  %630 = sbr.rel (%p1033_p2) target bundleno = 427 (0x1ab), region = 44  ;;  %1194 = vst [vmem:[%s1927_s6 + $0x28] sm:$0xff] (!%p1033_p2), %v1138_v27   ;;  %1154 = vst [vmem:[%s1929_s26] sm:$0xff] (!%p1033_p2), %v1153_v36   ;;  %v1173_v49 = vpack.c.bf16 (!%p1033_p2), %v736_v47, %v735_v46 }
 0x19a   : > { %v575_v58 = vadd.f32 %v514_v54, %v310_v50  ;;  %v591_v59 = vadd.f32 %v554_v55, %v326_v51  ;;  %v516_v60 = vpop.f32.mrb[13].mxu0  ;;  %v556_v61 = vpop.f32.mrb[13].mxu1  ;;  %1197 = vst [vmem:[%s1929_s26 + $0x8] sm:$0xff] (!%p1033_p2), %v1158_v40   ;;  %v738_v50 = vld [vmem:[#allocation2 + $0xb8] sm:$0xff] (!%p1033_p2) }
 0x19b   : > { %v576_v0 = vadd.f32 %v516_v60, %v311_v52  ;;  %v592_v1 = vadd.f32 %v556_v61, %v327_v53  ;;  %v518_v2 = vpop.f32.mrb[14].mxu0  ;;  %v558_v3 = vpop.f32.mrb[14].mxu1  ;;  %v635_v15 = vld [vmem:[#allocation2 + $0x40] sm:$0xff] (!%p1033_p2)  ;;  %v1178_v53 = vpack.c.bf16 (!%p1033_p2), %v738_v50, %v737_v48  ;;  %1200 = vst [vmem:[%s1929_s26 + $0x20] sm:$0xff] (!%p1033_p2), %v1173_v49  }
 0x19c   : > { %607 = vst [vmem:[#allocation2 + $0x60] sm:$0xff] %v575_v58  ;;  %623 = vst [vmem:[#allocation2 + $0xe0] sm:$0xff] %v591_v59  ;;  %v577_v4 = vadd.f32 %v518_v2, %v312_v56  ;;  %v593_v5 = vadd.f32 %v558_v3, %v328_v57  ;;  %v520_v6 = vpop.f32.mrb[15].mxu0  ;;  %v560_v7 = vpop.f32.mrb[15].mxu1  ;;  %v643_v28 = vld [vmem:[#allocation2 + $0xc0] sm:$0xff] (!%p1033_p2)  ;;  %v731_v39 = vld [vmem:[#allocation2 + $0x48] sm:$0xff] (!%p1033_p2) }
 0x19d   : > { %608 = vst [vmem:[#allocation2 + $0x68] sm:$0xff] %v576_v0  ;;  %624 = vst [vmem:[#allocation2 + $0xe8] sm:$0xff] %v592_v1  ;;  %v578_v8 = vadd.f32 %v520_v6, %v313_v62  ;;  %v594_v9 = vadd.f32 %v560_v7, %v329_v63  ;;  %v636_v16 = vld [vmem:[#allocation2 + $0x50] sm:$0xff] (!%p1033_p2)  ;;  %v739_v51 = vld [vmem:[#allocation2 + $0xc8] sm:$0xff] (!%p1033_p2) }
 0x19e   : > { %609 = vst [vmem:[#allocation2 + $0x70] sm:$0xff] %v577_v4  ;;  %625 = vst [vmem:[#allocation2 + $0xf0] sm:$0xff] %v593_v5  ;;  %v1123_v18 = vpack.c.bf16 (!%p1033_p2), %v636_v16, %v635_v15  ;;  %v644_v29 = vld [vmem:[#allocation2 + $0xd0] sm:$0xff] (!%p1033_p2)  ;;  %v732_v41 = vld [vmem:[#allocation2 + $0x58] sm:$0xff] (!%p1033_p2) }
 0x19f   : > { %610 = vst [vmem:[#allocation2 + $0x78] sm:$0xff] %v578_v8  ;;  %626 = vst [vmem:[#allocation2 + $0xf8] sm:$0xff] %v594_v9  ;;  %v1143_v31 = vpack.c.bf16 (!%p1033_p2), %v644_v29, %v643_v28  ;;  %v1163_v44 = vpack.c.bf16 (!%p1033_p2), %v732_v41, %v731_v39  ;;  %v740_v52 = vld [vmem:[#allocation2 + $0xd8] sm:$0xff] (!%p1033_p2) }
 0x1a0   : > { %1191 = vst [vmem:[%s1927_s6 + $0x10] sm:$0xff] %v1123_v18   ;;  %v1183_v54 = vpack.c.bf16 %v740_v52, %v739_v51  ;;  %1201 = vst [vmem:[%s1929_s26 + $0x28] sm:$0xff] %v1178_v53  }
 0x1a1   : > { %1195 = vst [vmem:[%s1927_s6 + $0x30] sm:$0xff] %v1143_v31   ;;  %1198 = vst [vmem:[%s1929_s26 + $0x10] sm:$0xff] %v1163_v44  }
 0x1a2   : > { %1202 = vst [vmem:[%s1929_s26 + $0x30] sm:$0xff] %v1183_v54  }
 0x1a3   : > { %v637_v19 = vld [vmem:[#allocation2 + $0x60] sm:$0xff] }
 0x1a4   : > { %v645_v30 = vld [vmem:[#allocation2 + $0xe0] sm:$0xff]  ;;  %v733_v42 = vld [vmem:[#allocation2 + $0x68] sm:$0xff] }
 0x1a5   : > { %v638_v20 = vld [vmem:[#allocation2 + $0x70] sm:$0xff]  ;;  %v741_v55 = vld [vmem:[#allocation2 + $0xe8] sm:$0xff] }
 0x1a6   : > { %v1128_v22 = vpack.c.bf16 %v638_v20, %v637_v19  ;;  %v646_v32 = vld [vmem:[#allocation2 + $0xf0] sm:$0xff]  ;;  %v734_v43 = vld [vmem:[#allocation2 + $0x78] sm:$0xff] }
 0x1a7   : > { %v1148_v35 = vpack.c.bf16 %v646_v32, %v645_v30  ;;  %v1168_v45 = vpack.c.bf16 %v734_v43, %v733_v42  ;;  %v742_v56 = vld [vmem:[#allocation2 + $0xf8] sm:$0xff] }
 0x1a8   : > { %1192 = vst [vmem:[%s1927_s6 + $0x18] sm:$0xff] %v1128_v22   ;;  %v1188_v57 = vpack.c.bf16 %v742_v56, %v741_v55 }
 0x1a9   : > { %1196 = vst [vmem:[%s1927_s6 + $0x38] sm:$0xff] %v1148_v35   ;;  %1199 = vst [vmem:[%s1929_s26 + $0x18] sm:$0xff] %v1168_v45  }
 0x1aa   : > { %1203 = vst [vmem:[%s1929_s26 + $0x38] sm:$0xff] %v1188_v57  }
 0x1ab PF: > { %s2161_s21 = sld [smem:[#allocation15_spill]]  ;;  %s2162_s24 = sld [smem:[#allocation22_spill]] }
 0x1ac   : > { %s842_s7 = sshll.u32 %s1927_s6, 4  ;;  %s824_s18 = scalar_lea.sflag [#allocation5], %s1924_s10  ;;  %s1998_s7 = int_to_ptr.vmem [resolvable:$true] %s842_s7 }
 0x1ad   : > { %s1448_s4 = scalar_lea.vmem %s1998_s7, 1024  ;;  %p2164_p10 = scmp.ne.s32.totalorder %s2152_s29, 0 }
 0x1ae   : > { %p1449_p13 = scmp.ne.s32.totalorder %s1998_s7, %s1448_s4  ;;  %s1639_s15 = smov [#allocation8]  }
 0x1af   : > { %s1452_s27 = sshll.u32 %s1639_s15, 4  ;;  %s1453_s27 = int_to_ptr.vmem [resolvable:$false] %s1452_s27 }
 0x1b0   : > { %p1450_p9 = pnand %p1449_p13, %p2164_p10  ;;  %s1454_s22 = scalar_lea.vmem %s1453_s27, 2048 }
 0x1b1   : > { %s1108_s2 = sshll.u32 %s2161_s21, 10  ;;  %s2163_s3 = smov %s2162_s24 }
 0x1b2   : > { %s1995_s28 = scalar_lea.hbm %s2162_s24, %s1108_s2  ;;  %p1451_p3 = pneg %p1450_p9 }
 0x1b3   : > { %p1455_p6 = scmp.lt.s32.totalorder %s1998_s7, %s1453_s27  ;;  %p1456_p11 = scmp.lt.s32.totalorder %s1454_s22, %s1448_s4 }
 0x1b5   : > { %p1457_p12 = por %p1456_p11, %p1455_p6 }
 0x1b7   : > { %p1458_p0 = pnand %p1457_p12, %p1451_p3 }
 0x1b9   : > { %1461 = shalt.err (!%p1458_p0)
}
 0x1ba   : > { %s1462_s11 = scalar_lea.hbm %s1995_s28, 1024  ;;  %s1466_s0 = scalar_lea.hbm %s2163_s3, 3072 }
 0x1bb   : > { %p1463_p8 = scmp.ne.s32.totalorder %s1995_s28, %s1462_s11  ;;  %p1467_p5 = scmp.lt.u32.totalorder %s1995_s28, %s2163_s3 }
 0x1bc   : > { %p1468_p4 = scmp.lt.u32.totalorder %s1466_s0, %s1462_s11  ;;  %p1470_p13 = scmp.lt.u32.totalorder %s1462_s11, %s1995_s28 }
 0x1bd   : > { %p1464_p7 = pnand %p1463_p8, %p2164_p10 }
 0x1be   : > { %p1469_p2 = por %p1468_p4, %p1467_p5 }
 0x1bf   : > { %p1465_p1 = pneg %p1464_p7 }
 0x1c0   : > { %p1471_p9 = por %p1470_p13, %p1469_p2 }
 0x1c2   : > { %p1472_p3 = pnand %p1471_p9, %p1465_p1 }
 0x1c4   : > { %1475 = shalt.err (!%p1472_p3)
}
 0x1c5   : > { %s1640_s4 = smov 64   ;;  %s1641_s27 = smov 4  }
 0x1c6   : > { %1225 = dma.vmem_to_hbm [thread:$0]  (%p2164_p10), %s1998_s7, 1024, %s1995_s28, %s824_s18, %s1640_s4, %s1640_s4, %s1641_s27  }
 0x1c7   : > { %s2165_s6 = sld [smem:[#allocation23_spill]]  ;;  %s858_s0 = sshll.u32 %s1929_s26, 4  ;;  %s2035_s0 = int_to_ptr.vmem [resolvable:$true] %s858_s0 }
 0x1c8   : > { %s829_s24 = scalar_lea.sflag [#allocation10], %s1924_s10  ;;  %s1476_s15 = scalar_lea.vmem %s2035_s0, 1024 }
 0x1c9   : > { %p1477_p6 = scmp.ne.s32.totalorder %s2035_s0, %s1476_s15  ;;  %s1642_s1 = smov [#allocation9]  }
 0x1ca   : > { %s1480_s28 = sshll.u32 %s1642_s1, 4  ;;  %s1481_s28 = int_to_ptr.vmem [resolvable:$false] %s1480_s28 }
 0x1cb   : > { %p1478_p11 = pnand %p1477_p6, %p2164_p10  ;;  %s1482_s21 = scalar_lea.vmem %s1481_s28, 2048 }
 0x1cc   : > { %p1483_p0 = scmp.lt.s32.totalorder %s2035_s0, %s1481_s28  ;;  %p1484_p8 = scmp.lt.s32.totalorder %s1482_s21, %s1476_s15 }
 0x1cd   : > { %s2032_s23 = scalar_lea.hbm %s2165_s6, %s1108_s2  ;;  %p1479_p12 = pneg %p1478_p11 }
 0x1ce   : > { %p1485_p7 = por %p1484_p8, %p1483_p0 }
 0x1d0   : > { %p1486_p1 = pnand %p1485_p7, %p1479_p12 }
 0x1d2   : > { %1489 = shalt.err (!%p1486_p1)
}
 0x1d3   : > { %s1490_s26 = scalar_lea.hbm %s2032_s23, 1024  ;;  %s1494_s1 = scalar_lea.hbm %s2165_s6, 3072 }
 0x1d4   : > { %p1491_p5 = scmp.ne.s32.totalorder %s2032_s23, %s1490_s26  ;;  %p1495_p13 = scmp.lt.u32.totalorder %s2032_s23, %s2165_s6 }
 0x1d5   : > { %p1496_p9 = scmp.lt.u32.totalorder %s1494_s1, %s1490_s26  ;;  %p1498_p6 = scmp.lt.u32.totalorder %s1490_s26, %s2032_s23 }
 0x1d6   : > { %p1492_p4 = pnand %p1491_p5, %p2164_p10 }
 0x1d7   : > { %p1497_p3 = por %p1496_p9, %p1495_p13 }
 0x1d8   : > { %p1493_p2 = pneg %p1492_p4 }
 0x1d9   : > { %p1499_p11 = por %p1498_p6, %p1497_p3 }
 0x1db   : > { %p1500_p12 = pnand %p1499_p11, %p1493_p2 }
 0x1dd   : > { %1503 = shalt.err (!%p1500_p12)
}
 0x1de   : > { %1226 = dma.vmem_to_hbm [thread:$0]  (%p2164_p10), %s2035_s0, 1024, %s2032_s23, %s829_s24, %s1640_s4, %s1640_s4, %s1641_s27  }
 0x1df PF: > { %p1244_p0 = scmp.ge.s32.totalorder %s1630_s25, 2  ;;  %s873_s11 = sand.u32 1, %s1578_s12  }
 0x1e0   : > { %p2166_p8 = scmp.ne.s32.totalorder %s2153_s30, 0  ;;  %s874_s15 = scalar_lea.sflag [#allocation5], %s873_s11 }
 0x1e2   : > { %p1237_p7 = pnand %p1244_p0, %p2166_p8 }
 0x1e4   : > { %1569 = dma.done.wait (!%p1237_p7), %s874_s15, 1024  }
 0x1e5   : > { %1571 = vsyncadd (!%p1237_p7), %s874_s15, 4294966272  ;;  %s883_s29 = scalar_lea.sflag [#allocation10], %s873_s11 }
 0x1e6   : > { %1573 = dma.done.wait (!%p1237_p7), %s883_s29, 1024  }
 0x1e7   : > { %1575 = vsyncadd (!%p1237_p7), %s883_s29, 4294966272  ;;  %s26_s25 = sadd.s32 1, %s1630_s25   ;;  %s2168_s21 = sld [smem:[#allocation16_spill]] }
 0x1e8   : > { %p2069_p1 = scmp.ge.s32.totalorder %s26_s25, 11   ;;  %s2169_s22 = sld [smem:[#allocation17_spill]] }
 0x1e9   : > { %s2170_s23 = sld [smem:[#allocation18_spill]]  ;;  %s2171_s24 = sld [smem:[#allocation19_spill]] }
 0x1ea   : > { %s2172_s12 = smov %s1582_s13  ;;  %s2173_s13 = smov %s1586_s14 }
 0x1eb   : > { %s2174_s14 = smov %s1764_s8  ;;  %s2175_s15 = smov %s1594_s16 }
 0x1ec   : > { %s2176_s16 = smov %s1598_s17  ;;  %s2177_s17 = smov %s1830_s5 }
 0x1ed   : > { %s2178_s18 = smov %s1606_s19  ;;  %s2179_s19 = smov %s1610_s20 }
 0x1ee   : > { %s2180_s20 = smov %s1767_s9  ;;  %25 = sbr.rel (!%p2069_p1) target bundleno = 19 (0x13), region = 111 }
 0x1f5   :  { %888 = vsyncpa [#allocation4], 1 }
 0x1f6   :  { %890 = vsyncpa [#allocation4 + $0x1], 1 }
 0x1f7   :  { %891 = vsyncpa [#allocation7], 1 }
 0x1f8   :  { %893 = vsyncpa [#allocation7 + $0x1], 1 }
 0x1f9   :  { %894 = vsyncpa [#allocation5], 1 }
 0x1fa   :  { %896 = vsyncpa [#allocation5 + $0x1], 1 }
 0x1fb   :  { %897 = vsyncpa [#allocation10], 1 }
 0x1fc   :  { %899 = vsyncpa [#allocation10 + $0x1], 1 }

</bundles_post_ra>
